<compile_context>
chip_gen: v7x
topology: tpu7x:2x2x1
jax: 0.10.0
libtpu: 0.0.40
codegen_flags: <defaults>
</compile_context>

<pallas_src>
import math

import numpy as np
import jax
import jax.numpy as jnp
from jax.experimental import pallas as pl
from jax.experimental.pallas import tpu as pltpu


# ------------------------------------------------------------- utilities ----
def _round_up(v, m):
    return (v + m - 1) // m * m


def _auto_node_tile(bs, n_nodes, k, n_down, ocp, itemsize,
                    budget_bytes=24 * 1024 * 1024):
    """Pick (node_tile, padded_n_nodes). Multi-tile tiles are multiples of 128
    (the D column block puts the node dim on the lane axis). Working set =
    double-buffered streamed blocks + double-buffered resident weight blocks
    + f32 scratch accumulator; budget fits every generation's default scoped
    VMEM (incl. v7x)."""
    n_full = _round_up(n_nodes, 8)
    if n_full <= 128:
        return n_full, n_full

    def est(t):
        return (2 * itemsize * bs * t * k        # xg block        (x2 buffers)
                + 2 * itemsize * n_down * t      # D column block  (x2 buffers)
                + 2 * itemsize * k * ocp         # resident W      (x2 buffers)
                + 2 * 4 * ocp                    # resident bias   (x2 buffers)
                + 2 * 4 * bs * n_down * ocp      # output block    (x2 buffers)
                + 4 * bs * n_down * ocp          # f32 scratch accumulator
                + 6 * t * ocp)                   # H intermediate (f32 + cast)

    tile = 1024
    while tile > 128 and est(tile) > budget_bytes:
        tile -= 128
    if tile >= n_full:
        return n_full, n_full
    return tile, _round_up(n_nodes, tile)


def _legalize_node_tile(node_tile, n_nodes):
    n_full = _round_up(n_nodes, 8)
    tm = _round_up(max(int(node_tile), 8), 8)
    if tm >= n_full:
        return n_full, n_full            # single full-extent tile
    tm = _round_up(tm, 128)              # multi-tile: lane constraint on D
    if tm >= n_full:
        return n_full, n_full
    return tm, _round_up(n_nodes, tm)


# ---------------------------------------------------------------- kernel ----
def _spiral_enblock_kernel(xg_ref, w_ref, b_ref, d_ref, o_ref, acc_ref):
    # xg_ref : (bs, TM, K)        gathered spiral features for this node tile
    # w_ref  : (K, OCP)           linear weight (transposed, lane-padded), resident
    # b_ref  : (1, OCP)           linear bias, f32, lane-padded, resident
    # d_ref  : (n_down, TM)       column slice of the dense down-transform
    # o_ref  : (bs, n_down, OCP)  output, written once at the last node tile
    # acc_ref: (bs, n_down, OCP)  f32 VMEM scratch accumulator
    t = pl.program_id(0)

    @pl.when(t == 0)
    def _init():
        acc_ref[...] = jnp.zeros_like(acc_ref)

    w = w_ref[...]
    b = b_ref[...]
    d = d_ref[...]
    for bi in range(xg_ref.shape[0]):            # static unroll over batch
        # SpiralConv linear: (TM, K) @ (K, OCP) on the MXU, f32 accumulate.
        h = jnp.dot(xg_ref[bi], w, preferred_element_type=jnp.float32)
        h = h + b
        # ELU, alpha = 1 (F.elu default); f32 on VPU/EUP; select hides the
        # dead exp branch so no clamp is needed.
        h = jnp.where(h > 0.0, h, jnp.exp(h) - 1.0)
        # Pool partial sum: D[:, tile] @ H -> (n_down, OCP), f32 accumulate.
        acc_ref[bi] += jnp.dot(d, h.astype(d.dtype),
                               preferred_element_type=jnp.float32)

    @pl.when(t == pl.num_programs(0) - 1)
    def _store():
        o_ref[...] = acc_ref[...].astype(o_ref.dtype)


# --------------------------------------------------------------- wrapper ----
def spiral_enblock(x, indices, weight, bias, down_transform_dense, *,
                   node_tile=None, compute_dtype=jnp.bfloat16):
    """
    x                    : (bs, n_nodes_in, in_ch)   float32
    indices              : (n_nodes, seq_len)        int32 spiral neighbor ids
    weight               : (out_ch, in_ch * seq_len) PyTorch nn.Linear layout
    bias                 : (out_ch,)
    down_transform_dense : (n_down, n_nodes)         dense pooling matrix
    compute_dtype        : MXU operand dtype (bf16 default; accumulation,
                           bias add and ELU stay in f32)
    returns              : (bs, n_down, out_ch)      x.dtype
    """
    bs, _, in_ch = x.shape
    n_nodes, seq_len = indices.shape
    out_ch = weight.shape[0]
    k = in_ch * seq_len
    n_down = down_transform_dense.shape[0]
    itemsize = np.dtype(compute_dtype).itemsize

    # --- lane-dense output channels (pad only if needed) --------------------
    ocp = out_ch if out_ch % 128 == 0 else _round_up(out_ch, 128)

    # --- node tiling ---------------------------------------------------------
    if node_tile is None:
        tm, n_pad = _auto_node_tile(bs, n_nodes, k, n_down, ocp, itemsize)
    else:
        tm, n_pad = _legalize_node_tile(node_tile, n_nodes)
    n_tiles = n_pad // tm

    # --- glue: spiral gather (index_select + view of SpiralConv) ------------
    # The (small) index table is padded, not the gathered tensor, so the
    # seq_len-x larger xg is materialised exactly once, at padded size, in
    # compute_dtype (half the HBM write for bf16).
    # TODO(synk): fold this gather into the kernel (scalar-prefetched index
    # tiles + per-seq weight slabs) to remove the seq_len-x inflated xg HBM
    # round trip for the small-in_ch early layers.
    idx = indices
    if n_pad != n_nodes:
        idx = jnp.pad(indices, ((0, n_pad - n_nodes), (0, 0)))   # pad -> node 0
    xg = x.astype(compute_dtype)[:, idx.reshape(-1), :].reshape(bs, n_pad, k)

    w_t = weight.T.astype(compute_dtype)                          # (k, out_ch)
    b2 = bias.reshape(1, out_ch).astype(jnp.float32)
    if ocp != out_ch:
        w_t = jnp.zeros((k, ocp), compute_dtype).at[:, :out_ch].set(w_t)
        b2 = jnp.zeros((1, ocp), jnp.float32).at[:, :out_ch].set(b2)

    # --- down-transform: un-transposed, zero-padded columns ------------------
    # Consumed as (n_down, tm) column blocks with a plain jnp.dot (no in-kernel
    # transpose); zero columns make padded / garbage pad-node rows inert.
    # TODO(synk): the torch.sparse COO down_transform is ~3 nnz/row; a sparse
    # pool (scalar-prefetched per-row neighbor lists) would drop both the dense
    # pool MXU work and the D HBM stream at production mesh sizes.
    d = down_transform_dense.astype(compute_dtype)
    if n_pad != n_nodes:
        d = jnp.pad(d, ((0, 0), (0, n_pad - n_nodes)))

    flops = 2 * bs * n_pad * k * ocp + 2 * bs * n_pad * n_down * ocp
    bytes_accessed = (itemsize * (bs * n_pad * k + k * ocp + n_down * n_pad)
                      + 4 * (ocp + bs * n_down * ocp))

    out = pl.pallas_call(
        _spiral_enblock_kernel,
        out_shape=jax.ShapeDtypeStruct((bs, n_down, ocp), x.dtype),
        grid_spec=pltpu.PrefetchScalarGridSpec(
            num_scalar_prefetch=0,
            grid=(n_tiles,),                                   # node reduction
            in_specs=[
                pl.BlockSpec((bs, tm, k), lambda t: (0, t, 0)),   # streamed xg
                pl.BlockSpec((k, ocp), lambda t: (0, 0)),         # resident W
                pl.BlockSpec((1, ocp), lambda t: (0, 0)),         # resident b
                pl.BlockSpec((n_down, tm), lambda t: (0, t)),     # streamed D
            ],
            out_specs=pl.BlockSpec((bs, n_down, ocp), lambda t: (0, 0, 0)),
            scratch_shapes=[pltpu.VMEM((bs, n_down, ocp), jnp.float32)],
        ),
        compiler_params=pltpu.CompilerParams(
            dimension_semantics=("arbitrary",),
            vmem_limit_bytes=32 * 1024 * 1024),
        cost_estimate=pl.CostEstimate(
            flops=int(flops),
            transcendentals=int(bs * n_pad * ocp),
            bytes_accessed=int(bytes_accessed)),
    )(xg, w_t, b2, d)
    # TODO(synk): on v7x with bs < 2 the single reduction grid axis leaves the
    # second TensorCore idle; split the node-tile axis across cores (two
    # partial accumulators + a final add) for dual-TC utilisation.

    return out if ocp == out_ch else out[:, :, :out_ch]


# ----------------------------------------------------------- pure-JAX ref ---
def spiral_enblock_ref(x, indices, weight, bias, down_transform_dense):
    bs, _, in_ch = x.shape
    n_nodes, seq_len = indices.shape
    xg = x[:, indices.reshape(-1), :].reshape(bs, n_nodes, in_ch * seq_len)
    h = xg @ weight.T + bias
    h = jnp.where(h > 0.0, h, jnp.exp(jnp.minimum(h, 0.0)) - 1.0)
    return jnp.einsum("rn,bnc->brc", down_transform_dense, h)


# ------------------------------------------------------------------ main ----
if __name__ == "__main__":
    key = jax.random.PRNGKey(0)
    k_x, k_w, k_b, k_idx, k_d, k_x2, k_idx2, k_d2 = jax.random.split(key, 8)

    bs, in_ch, out_ch, seq_len = 2, 4, 32, 8
    fan_in = in_ch * seq_len

    # Linear params: xavier_uniform_ weight (as reset_parameters); small
    # nonzero bias simply to exercise the bias-add path.
    limit = math.sqrt(6.0 / (fan_in + out_ch))
    weight = jax.random.uniform(k_w, (out_ch, fan_in),
                                minval=-limit, maxval=limit, dtype=jnp.float32)
    bias = 0.1 * jax.random.normal(k_b, (out_ch,), dtype=jnp.float32)

    # ---- test 1: tiny mesh, f32 compute path, single node tile -------------
    n_nodes, n_down = 16, 8
    x = jax.random.normal(k_x, (bs, n_nodes, in_ch), dtype=jnp.float32)
    indices = jax.random.randint(k_idx, (n_nodes, seq_len), 0, n_nodes,
                                 dtype=jnp.int32)
    down = jax.random.uniform(k_d, (n_down, n_nodes), dtype=jnp.float32)
    down = down / jnp.sum(down, axis=1, keepdims=True)

    ref = spiral_enblock_ref(x, indices, weight, bias, down)
    out = spiral_enblock(x, indices, weight, bias, down,
                         compute_dtype=jnp.float32)
    out = jax.block_until_ready(out)
    assert out.shape == (bs, n_down, out_ch)
    assert jnp.allclose(out, ref, atol=1e-5, rtol=1e-5)

    # ---- test 2: larger mesh, default bf16 compute, 2 node tiles -----------
    n_nodes2, n_down2 = 200, 16
    x2 = jax.random.normal(k_x2, (bs, n_nodes2, in_ch), dtype=jnp.float32)
    indices2 = jax.random.randint(k_idx2, (n_nodes2, seq_len), 0, n_nodes2,
                                  dtype=jnp.int32)
    down2 = jax.random.uniform(k_d2, (n_down2, n_nodes2), dtype=jnp.float32)
    down2 = down2 / jnp.sum(down2, axis=1, keepdims=True)

    ref2 = spiral_enblock_ref(x2, indices2, weight, bias, down2)
    out2 = spiral_enblock(x2, indices2, weight, bias, down2, node_tile=128)
    out2 = jax.block_until_ready(out2)
    assert out2.shape == (bs, n_down2, out_ch)
    assert jnp.allclose(out2, ref2, atol=5e-2, rtol=5e-2)

    # ---- test 3: auto-picked tile (single full tile at these shapes) -------
    out3 = spiral_enblock(x2, indices2, weight, bias, down2)
    out3 = jax.block_until_ready(out3)
    assert jnp.allclose(out3, ref2, atol=5e-2, rtol=5e-2)

    print("KERNEL_OK")
</pallas_src>

<mosaic_0001>
module attributes {stable_mosaic.version = 11 : i64} {
  func.func @_spiral_enblock_kernel(%arg0: i32, %arg1: memref<2x16x32xf32, #tpu.memory_space<vmem>>, %arg2: memref<32x128xf32, #tpu.memory_space<vmem>>, %arg3: memref<1x128xf32, #tpu.memory_space<vmem>>, %arg4: memref<8x16xf32, #tpu.memory_space<vmem>>, %arg5: memref<2x8x128xf32, #tpu.memory_space<vmem>>, %arg6: memref<2x8x128xf32, #tpu.memory_space<vmem>>) attributes {dimension_semantics = [#tpu.dimension_semantics<arbitrary>], iteration_bounds = array<i64: 1>, scalar_prefetch = 0 : i64, scratch_operands = 1 : i64, tpu.core_type = #tpu.core_type<tc>, window_params = [{transform_indices = @transform_0, window_bounds = array<i64: 2, 16, 32>}, {pipeline_mode = #tpu.pipeline_mode<synchronous>, transform_indices = @transform_1, window_bounds = array<i64: 32, 128>}, {pipeline_mode = #tpu.pipeline_mode<synchronous>, transform_indices = @transform_2, window_bounds = array<i64: 1, 128>}, {transform_indices = @transform_3, window_bounds = array<i64: 8, 16>}, {pipeline_mode = #tpu.pipeline_mode<synchronous>, transform_indices = @transform_4, window_bounds = array<i64: 2, 8, 128>}]} {
    %c0_i32 = arith.constant 0 : i32
    %0 = arith.cmpi eq, %arg0, %c0_i32 : i32
    %1 = arith.extui %0 : i1 to i32
    %c0_i32_0 = arith.constant 0 : i32
    %2 = arith.cmpi ne, %1, %c0_i32_0 : i32
    scf.if %2 {
      %cst_32 = arith.constant 0.000000e+00 : f32
      %45 = vector.broadcast %cst_32 : f32 to vector<2x8x128xf32>
      %c0_33 = arith.constant 0 : index
      %c0_34 = arith.constant 0 : index
      %c0_35 = arith.constant 0 : index
      %46 = vector.load %arg6[%c0_33, %c0_34, %c0_35] : memref<2x8x128xf32, #tpu.memory_space<vmem>>, vector<2x8x128xf32>
      tpu.vector_store %arg6[%c0_33, %c0_34, %c0_35], %45 {strides = array<i32>} : memref<2x8x128xf32, #tpu.memory_space<vmem>>, vector<2x8x128xf32>,
    } else {
    }
    %c0 = arith.constant 0 : index
    %c0_1 = arith.constant 0 : index
    %3 = vector.load %arg2[%c0, %c0_1] : memref<32x128xf32, #tpu.memory_space<vmem>>, vector<32x128xf32>
    %c0_2 = arith.constant 0 : index
    %c0_3 = arith.constant 0 : index
    %4 = vector.load %arg3[%c0_2, %c0_3] : memref<1x128xf32, #tpu.memory_space<vmem>>, vector<1x128xf32>
    %c0_4 = arith.constant 0 : index
    %c0_5 = arith.constant 0 : index
    %5 = vector.load %arg4[%c0_4, %c0_5] : memref<8x16xf32, #tpu.memory_space<vmem>>, vector<8x16xf32>
    %c0_6 = arith.constant 0 : index
    %c0_7 = arith.constant 0 : index
    %c0_8 = arith.constant 0 : index
    %6 = vector.load %arg1[%c0_6, %c0_7, %c0_8] : memref<2x16x32xf32, #tpu.memory_space<vmem>>, vector<1x16x32xf32>
    %7 = vector.shape_cast %6 : vector<1x16x32xf32> to vector<16x32xf32>
    %cst = arith.constant dense<0.000000e+00> : vector<16x128xf32>
    %8 = tpu.matmul %7, %3, %cst {dimension_numbers = #tpu.dot_dimension_numbers<[1], [0], [0], [1], [0, 0, 1, 1], [], []>} : vector<16x32xf32>, vector<32x128xf32>, vector<16x128xf32> -> vector<16x128xf32>
    %9 = vector.broadcast %4 : vector<1x128xf32> to vector<16x128xf32>
    %10 = arith.addf %8, %9 : vector<16x128xf32>
    %cst_9 = arith.constant 0.000000e+00 : f32
    %11 = vector.broadcast %cst_9 : f32 to vector<16x128xf32>
    %12 = arith.cmpf ogt, %10, %11 : vector<16x128xf32>
    %13 = math.exp %10 : vector<16x128xf32>
    %cst_10 = arith.constant 1.000000e+00 : f32
    %14 = vector.broadcast %cst_10 : f32 to vector<16x128xf32>
    %15 = arith.subf %13, %14 : vector<16x128xf32>
    %16 = arith.select %12, %10, %15 : vector<16x128xi1>, vector<16x128xf32>
    %c0_11 = arith.constant 0 : index
    %c0_12 = arith.constant 0 : index
    %c0_13 = arith.constant 0 : index
    %17 = vector.load %arg6[%c0_11, %c0_12, %c0_13] : memref<2x8x128xf32, #tpu.memory_space<vmem>>, vector<1x8x128xf32>
    %18 = vector.shape_cast %17 : vector<1x8x128xf32> to vector<8x128xf32>
    %cst_14 = arith.constant dense<0.000000e+00> : vector<8x128xf32>
    %19 = tpu.matmul %5, %16, %cst_14 {dimension_numbers = #tpu.dot_dimension_numbers<[1], [0], [0], [1], [0, 0, 1, 1], [], []>} : vector<8x16xf32>, vector<16x128xf32>, vector<8x128xf32> -> vector<8x128xf32>
    %20 = arith.addf %18, %19 : vector<8x128xf32>
    %c0_15 = arith.constant 0 : index
    %c0_16 = arith.constant 0 : index
    %c0_17 = arith.constant 0 : index
    %21 = vector.load %arg6[%c0_15, %c0_16, %c0_17] : memref<2x8x128xf32, #tpu.memory_space<vmem>>, vector<1x8x128xf32>
    %22 = vector.shape_cast %21 : vector<1x8x128xf32> to vector<8x128xf32>
    %23 = vector.shape_cast %20 : vector<8x128xf32> to vector<1x8x128xf32>
    tpu.vector_store %arg6[%c0_15, %c0_16, %c0_17], %23 {strides = array<i32>} : memref<2x8x128xf32, #tpu.memory_space<vmem>>, vector<1x8x128xf32>,
    %c1 = arith.constant 1 : index
    %c0_18 = arith.constant 0 : index
    %c0_19 = arith.constant 0 : index
    %24 = vector.load %arg1[%c1, %c0_18, %c0_19] : memref<2x16x32xf32, #tpu.memory_space<vmem>>, vector<1x16x32xf32>
    %25 = vector.shape_cast %24 : vector<1x16x32xf32> to vector<16x32xf32>
    %cst_20 = arith.constant dense<0.000000e+00> : vector<16x128xf32>
    %26 = tpu.matmul %25, %3, %cst_20 {dimension_numbers = #tpu.dot_dimension_numbers<[1], [0], [0], [1], [0, 0, 1, 1], [], []>} : vector<16x32xf32>, vector<32x128xf32>, vector<16x128xf32> -> vector<16x128xf32>
    %27 = vector.broadcast %4 : vector<1x128xf32> to vector<16x128xf32>
    %28 = arith.addf %26, %27 : vector<16x128xf32>
    %cst_21 = arith.constant 0.000000e+00 : f32
    %29 = vector.broadcast %cst_21 : f32 to vector<16x128xf32>
    %30 = arith.cmpf ogt, %28, %29 : vector<16x128xf32>
    %31 = math.exp %28 : vector<16x128xf32>
    %cst_22 = arith.constant 1.000000e+00 : f32
    %32 = vector.broadcast %cst_22 : f32 to vector<16x128xf32>
    %33 = arith.subf %31, %32 : vector<16x128xf32>
    %34 = arith.select %30, %28, %33 : vector<16x128xi1>, vector<16x128xf32>
    %c1_23 = arith.constant 1 : index
    %c0_24 = arith.constant 0 : index
    %c0_25 = arith.constant 0 : index
    %35 = vector.load %arg6[%c1_23, %c0_24, %c0_25] : memref<2x8x128xf32, #tpu.memory_space<vmem>>, vector<1x8x128xf32>
    %36 = vector.shape_cast %35 : vector<1x8x128xf32> to vector<8x128xf32>
    %cst_26 = arith.constant dense<0.000000e+00> : vector<8x128xf32>
    %37 = tpu.matmul %5, %34, %cst_26 {dimension_numbers = #tpu.dot_dimension_numbers<[1], [0], [0], [1], [0, 0, 1, 1], [], []>} : vector<8x16xf32>, vector<16x128xf32>, vector<8x128xf32> -> vector<8x128xf32>
    %38 = arith.addf %36, %37 : vector<8x128xf32>
    %c1_27 = arith.constant 1 : index
    %c0_28 = arith.constant 0 : index
    %c0_29 = arith.constant 0 : index
    %39 = vector.load %arg6[%c1_27, %c0_28, %c0_29] : memref<2x8x128xf32, #tpu.memory_space<vmem>>, vector<1x8x128xf32>
    %40 = vector.shape_cast %39 : vector<1x8x128xf32> to vector<8x128xf32>
    %41 = vector.shape_cast %38 : vector<8x128xf32> to vector<1x8x128xf32>
    tpu.vector_store %arg6[%c1_27, %c0_28, %c0_29], %41 {strides = array<i32>} : memref<2x8x128xf32, #tpu.memory_space<vmem>>, vector<1x8x128xf32>,
    %c0_i32_30 = arith.constant 0 : i32
    %42 = arith.cmpi eq, %arg0, %c0_i32_30 : i32
    %43 = arith.extui %42 : i1 to i32
    %c0_i32_31 = arith.constant 0 : i32
    %44 = arith.cmpi ne, %43, %c0_i32_31 : i32
    scf.if %44 {
      %c0_32 = arith.constant 0 : index
      %c0_33 = arith.constant 0 : index
      %c0_34 = arith.constant 0 : index
      %45 = vector.load %arg6[%c0_32, %c0_33, %c0_34] : memref<2x8x128xf32, #tpu.memory_space<vmem>>, vector<2x8x128xf32>
      %c0_35 = arith.constant 0 : index
      %c0_36 = arith.constant 0 : index
      %c0_37 = arith.constant 0 : index
      %46 = vector.load %arg5[%c0_35, %c0_36, %c0_37] : memref<2x8x128xf32, #tpu.memory_space<vmem>>, vector<2x8x128xf32>
      tpu.vector_store %arg5[%c0_35, %c0_36, %c0_37], %45 {strides = array<i32>} : memref<2x8x128xf32, #tpu.memory_space<vmem>>, vector<2x8x128xf32>,
    } else {
    }
    return
  }
  func.func @transform_0(%arg0: i32) -> (i32, i32, i32) {
    %c0_i32 = arith.constant 0 : i32
    %c0_i32_0 = arith.constant 0 : i32
    %c0_i32_1 = arith.constant 0 : i32
    return %c0_i32, %arg0, %c0_i32_0 : i32, i32, i32
  }
  func.func @transform_1(%arg0: i32) -> (i32, i32) {
    %c0_i32 = arith.constant 0 : i32
    %c0_i32_0 = arith.constant 0 : i32
    %c0_i32_1 = arith.constant 0 : i32
    return %c0_i32, %c0_i32_0 : i32, i32
  }
  func.func @transform_2(%arg0: i32) -> (i32, i32) {
    %c0_i32 = arith.constant 0 : i32
    %c0_i32_0 = arith.constant 0 : i32
    %c0_i32_1 = arith.constant 0 : i32
    return %c0_i32, %c0_i32_0 : i32, i32
  }
  func.func @transform_3(%arg0: i32) -> (i32, i32) {
    %c0_i32 = arith.constant 0 : i32
    %c0_i32_0 = arith.constant 0 : i32
    return %c0_i32, %arg0 : i32, i32
  }
  func.func @transform_4(%arg0: i32) -> (i32, i32, i32) {
    %c0_i32 = arith.constant 0 : i32
    %c0_i32_0 = arith.constant 0 : i32
    %c0_i32_1 = arith.constant 0 : i32
    %c0_i32_2 = arith.constant 0 : i32
    return %c0_i32, %c0_i32_0, %c0_i32_1 : i32, i32, i32
  }
}

</mosaic_0001>

<bundles_post_ra>
// kernel: tpu_custom_call.1
= control target key start
LH: loop header
LB: loop body
LE: loop exit
PB: predicated region body
PF: predicated region fallthrough
CT: control target
= control target key end

     0   :  { %9 = vsyncpa [#allocation4], 0  ;;  %s693_s0 = inlined_call_operand.hbm [shape: f32[2,16,32], index: 0, kind: input, shape index: {}]   ;;  %s694_s1 = inlined_call_operand.hbm [shape: f32[32,128], index: 1, kind: input, shape index: {}]   ;;  %s695_s2 = inlined_call_operand.vmem [shape: f32[1,128], index: 2, kind: input, shape index: {}]   ;;  %s696_s3 = inlined_call_operand.vmem [shape: f32[8,16], index: 3, kind: input, shape index: {}]   ;;  %s697_s4 = inlined_call_operand.hbm [shape: f32[2,8,128], index: 4, kind: output, shape index: {}]  }
   0x1   :  { %10 = vsyncpa [#allocation7], 0 }
   0x2   :  { %11 = vsyncpa [#allocation5], 0  ;;  %s603_s15 = smov [#allocation3]   ;;  %s531_s19 = scalar_lea.hbm %s693_s0, 512 }
   0x3   :  { %s17_s16 = sshll.u32 %s603_s15, 4  ;;  %p532_p0 = scmp.ne.s32.totalorder %s693_s0, %s531_s19  ;;  %s18_s16 = int_to_ptr.vmem [resolvable:$true] %s17_s16 }
   0x4   :  { %p535_p1 = scmp.lt.u32.totalorder %s531_s19, %s693_s0 }
   0x6   :  { %p537_p2 = pnand %p535_p1, %p532_p0 }
   0x8   :  { %540 = shalt.err (!%p537_p2)
}
   0x9   :  { %s541_s24 = scalar_lea.vmem %s18_s16, 512  ;;  %p546_p4 = scmp.lt.s32.totalorder %s18_s16, %s18_s16 }
   0xa   :  { %p542_p3 = scmp.ne.s32.totalorder %s18_s16, %s541_s24  ;;  %p547_p5 = scmp.lt.s32.totalorder %s541_s24, %s541_s24 }
   0xc   :  { %p548_p6 = por %p547_p5, %p546_p4 }
   0xe   :  { %p549_p7 = pnand %p548_p6, %p542_p3 }
  0x10   :  { %552 = shalt.err (!%p549_p7)
}
  0x11   :  { %s604_s25 = smov 128   ;;  %s605_s26 = smov 8  }
  0x12   :  { %23 = dma.hbm_to_vmem [thread:$0]  %s693_s0, 512, %s18_s16, [#allocation4], %s604_s25, %s604_s25, %s605_s26  }
  0x13   :  { %s606_s29 = smov [#allocation6]   ;;  %s553_s7 = scalar_lea.hbm %s694_s1, 512 }
  0x14   :  { %s29_s30 = sshll.u32 %s606_s29, 4  ;;  %p554_p8 = scmp.ne.s32.totalorder %s694_s1, %s553_s7  ;;  %s30_s30 = int_to_ptr.vmem [resolvable:$true] %s29_s30 }
  0x15   :  { %p557_p9 = scmp.lt.u32.totalorder %s553_s7, %s694_s1 }
  0x17   :  { %p559_p10 = pnand %p557_p9, %p554_p8 }
  0x19   :  { %562 = shalt.err (!%p559_p10)
}
  0x1a   :  { %s563_s12 = scalar_lea.vmem %s30_s30, 512  ;;  %p568_p12 = scmp.lt.s32.totalorder %s30_s30, %s30_s30 }
  0x1b   :  { %p564_p11 = scmp.ne.s32.totalorder %s30_s30, %s563_s12  ;;  %p569_p13 = scmp.lt.s32.totalorder %s563_s12, %s563_s12 }
  0x1d   :  { %p570_p0 = por %p569_p13, %p568_p12 }
  0x1f   :  { %p571_p1 = pnand %p570_p0, %p564_p11 }
  0x21   :  { %574 = shalt.err (!%p571_p1)
}
  0x22   :  { %35 = dma.hbm_to_vmem [thread:$0]  %s694_s1, 512, %s30_s30, [#allocation7], %s604_s25, %s604_s25, %s605_s26  }
  0x23   :  { %597 = dma.done.wait [#allocation4], 512  }
  0x24   :  { %598 = vsyncadd [#allocation4], 4294966784 }
  0x25   :  { %599 = dma.done.wait [#allocation7], 512  }
  0x26   :  { %600 = vsyncadd [#allocation7], 4294966784  ;;  %vm66_vm0 = vcmask 261120   ;;  %v52_v0 = vld [vmem:[#allocation6] sm:$0xff]  ;;  %v53_v1 = vld [vmem:[#allocation6 + $0x8] sm:$0xff]  ;;  %v607_v8 = vmov 0.0|0.0  }
  0x27   :  { %v54_v2 = vld [vmem:[#allocation6 + $0x10] sm:$0xff]  ;;  %v493_v3 = vpack.c.bf16 %v53_v1, %v52_v0  ;;  %v55_v4 = vld [vmem:[#allocation6 + $0x18] sm:$0xff]  ;;  %v58_v5 = vld [vmem:[#allocation3] sm:$0xff]  ;;  %501 = vmatprep.subr.bf16.mxu1 %v607_v8  ;;  %vm608_vm1 = vmmov 0   ;;  %v609_v9 = vmov 0.0   ;;  %vm159_vm4 = vcmask 130048  }
  0x28   :  { %v497_v6 = vpack.c.bf16 %v55_v4, %v54_v2  ;;  %465 = vmatprep.mubr.msk.f32.mxu0 %vm66_vm0, %v58_v5  ;;  %v59_v7 = vld [vmem:[#allocation3 + $0x8] sm:$0xff]  ;;  %472 = vmatprep.mubr.msk.f32.mxu1 %vm608_vm1, %v609_v9  ;;  %v428_v10 = vld [vmem:[%s695_s2] ss:$0 sm:$0xff]  ;;  %v236_v25 = vld [vmem:[#allocation3 + $0x10] sm:$0xff] }
  0x29   :  { %494 = vmatprep.subr.bf16.mxu0 %v493_v3  ;;  %v57_v24 = vld [vmem:[%s696_s3] sm:$0xff]  ;;  %v237_v26 = vld [vmem:[#allocation3 + $0x18] sm:$0xff]  ;;  %s610_s3 = smov [#allocation8]  }
  0x2a   :  { %496 = vmatpush3.bf16.msra.mxu0 %v493_v3  ;;  %s415_s16 = sshll.u32 %s610_s3, 4  ;;  %s416_s16 = int_to_ptr.vmem [resolvable:$true] %s415_s16 }
  0x2b   :  { %498 = vmatprep.subr.bf16.mxu0 %v497_v6  ;;  %s575_s17 = scalar_lea.vmem %s416_s16, 256  ;;  %p580_p3 = scmp.lt.s32.totalorder %s416_s16, %s416_s16 }
  0x2c   :  { %p576_p2 = scmp.ne.s32.totalorder %s416_s16, %s575_s17  ;;  %p581_p4 = scmp.lt.s32.totalorder %s575_s17, %s575_s17 }
  0x2e   :  { %500 = vmatpush3.bf16.msra.mxu0 %v497_v6  ;;  %p582_p5 = por %p581_p4, %p580_p3 }
  0x2f   :  { %512 = vmatprep.subr.bf16.mxu0 %v607_v8 }
  0x30   :  { %p583_p6 = pnand %p582_p5, %p576_p2 }
  0x31   :  { %466 = vmatmul.mubr.msk.f32.vlgmr.msra.gmra.mrb[0].mxu0 %vm66_vm0, %v59_v7 }
  0x32   :  { %490 = vmatprep.mubr.msk.f32.mxu0 %vm608_vm1, %v609_v9 }
 0x104   :  { %v467_v11 = vpop.f32.mrb[0].mxu0 }
 0x105   :  { %v145_v12 = vadd.f32 %v467_v11, %v428_v10  ;;  %v139_v13 = vpop.f32.mrb[1].mxu0 }
 0x106   :  { %v140_v14 = vadd.f32 %v428_v10, %v139_v13 }
 0x107   :  { %v152_v15 = vmul.f32 1.442695, %v145_v12  ;;  %vm149_vm2 = vcmp.gt.f32.partialorder %v145_v12, 0.0 }
 0x108   :  { %v150_v16 = vmul.f32 1.442695, %v140_v14  ;;  %vm148_vm3 = vcmp.gt.f32.partialorder %v140_v14, 0.0 }
 0x109   :  { %523 = vpow2.f32 %v152_v15 }
 0x10a   :  { %525 = vpow2.f32 %v150_v16 }
 0x113   :  { %v524_v17 = vpop.eup %523 }
 0x114   :  { %v526_v18 = vpop.eup %525  ;;  %v432_v19 = vadd.f32 -1.0, %v524_v17 }
 0x115   :  { %v431_v20 = vadd.f32 -1.0, %v526_v18 }
 0x116   :  { %v157_v21 = vsel %vm149_vm2, %v145_v12, %v432_v19 }
 0x117   :  { %v156_v22 = vsel %vm148_vm3, %v140_v14, %v431_v20 }
 0x118   :  { %v502_v23 = vpack.c.bf16 %v157_v21, %v156_v22 }
 0x11a   :  { %503 = vmatpush3.bf16.msra.mxu1 %v502_v23 }
 0x11b   :  { %505 = vmatprep.subr.bf16.mxu1 %v493_v3 }
 0x11d   :  { %473 = vmatmul.mubr.msk.f32.vlgmr.msra.gmra.mrb[0].mxu1 %vm159_vm4, %v57_v24 }
 0x11e   :  { %507 = vmatpush3.bf16.msra.mxu1 %v493_v3  ;;  %483 = vmatprep.mubr.msk.f32.mxu1 %vm66_vm0, %v236_v25 }
 0x11f   :  { %509 = vmatprep.subr.bf16.mxu1 %v497_v6 }
 0x122   :  { %511 = vmatpush3.bf16.msra.mxu1 %v497_v6 }
 0x125   :  { %484 = vmatmul.mubr.msk.f32.vlgmr.msra.gmra.mrb[2].mxu1 %vm66_vm0, %v237_v26 }
 0x1f0   :  { %v229_v27 = vpop.f32.mrb[0].mxu1 }
 0x1f1   :  { %408 = vst [vmem:[#allocation8] sm:$0xff] %v229_v27  ;;  %v474_v28 = vpop.f32.mrb[1].mxu1 }
 0x1f8   :  { %v485_v29 = vpop.f32.mrb[2].mxu1 }
 0x1f9   :  { %v316_v30 = vadd.f32 %v485_v29, %v428_v10  ;;  %v310_v31 = vpop.f32.mrb[3].mxu1 }
 0x1fa   :  { %v311_v32 = vadd.f32 %v428_v10, %v310_v31 }
 0x1fb   :  { %v323_v33 = vmul.f32 1.442695, %v316_v30  ;;  %vm320_vm5 = vcmp.gt.f32.partialorder %v316_v30, 0.0 }
 0x1fc   :  { %v321_v34 = vmul.f32 1.442695, %v311_v32  ;;  %vm319_vm6 = vcmp.gt.f32.partialorder %v311_v32, 0.0 }
 0x1fd   :  { %527 = vpow2.f32 %v323_v33 }
 0x1fe   :  { %529 = vpow2.f32 %v321_v34 }
 0x207   :  { %v528_v35 = vpop.eup %527 }
 0x208   :  { %v530_v36 = vpop.eup %529  ;;  %v437_v37 = vadd.f32 -1.0, %v528_v35 }
 0x209   :  { %v436_v38 = vadd.f32 -1.0, %v530_v36 }
 0x20a   :  { %v328_v39 = vsel %vm320_vm5, %v316_v30, %v437_v37 }
 0x20b   :  { %v327_v40 = vsel %vm319_vm6, %v311_v32, %v436_v38 }
 0x20c   :  { %v513_v41 = vpack.c.bf16 %v328_v39, %v327_v40 }
 0x20e   :  { %514 = vmatpush3.bf16.msra.mxu0 %v513_v41 }
 0x211   :  { %491 = vmatmul.mubr.msk.f32.vlgmr.msra.gmra.mrb[2].mxu0 %vm159_vm4, %v57_v24 }
 0x2e4   :  { %v397_v42 = vpop.f32.mrb[2].mxu0 }
 0x2e5   :  { %409 = vst [vmem:[#allocation8 + $0x8] sm:$0xff] %v397_v42  ;;  %v492_v43 = vpop.f32.mrb[3].mxu0 }
 0x2e6   :  { %586 = shalt.err (!%p583_p6)
}
 0x2e7   :  { %s587_s20 = scalar_lea.hbm %s697_s4, 256 }
 0x2e8   :  { %p588_p7 = scmp.ne.s32.totalorder %s697_s4, %s587_s20  ;;  %p591_p8 = scmp.lt.u32.totalorder %s587_s20, %s697_s4 }
 0x2ea   :  { %p593_p9 = pnand %p591_p8, %p588_p7 }
 0x2ec   :  { %596 = shalt.err (!%p593_p9)
}
 0x2ed   :  { %421 = dma.vmem_to_hbm [thread:$0]  %s416_s16, 256, %s697_s4, [#allocation5], %s604_s25, %s604_s25, %s605_s26  }
 0x2ee   :  { %601 = dma.done.wait [#allocation5], 256  }
 0x2ef   :  { %602 = vsyncadd [#allocation5], 4294967040 }
 0x2f0   :  { %425 = vsyncpa [#allocation4], 1 }
 0x2f1   :  { %426 = vsyncpa [#allocation7], 1 }
 0x2f2   :  { %427 = vsyncpa [#allocation5], 1 }

</bundles_post_ra>
